<compile_context>
chip_gen: v5e
topology: v5e:2x2
jax: 0.10.0
libtpu: 0.0.40
codegen_flags: <defaults>
</compile_context>

<pallas_src>
import functools

import jax
import jax.numpy as jnp
from jax.experimental import pallas as pl
from jax.experimental.pallas import tpu as pltpu

LANE = 128  # TPU lane width; hidden dim is padded to a multiple of this.


# ----------------------------- Pallas kernels ------------------------------

def _dual_fused_kernel(xs_ref, xu_ref, w_ref, b_ref, os_ref, ou_ref, loss_ref,
                       *, inv_count):
    """Delegate (Linear + ReLU) for xs and xu plus fused MSE loss.

    xs_ref, xu_ref: (N, D)   bf16
    w_ref:          (D, Hp)  bf16  -- real hidden columns, zero-padded to Hp
    b_ref:          (1, Hp)  f32   -- zero-padded
    os_ref, ou_ref: (N, Hp)  bf16  -- relu(x @ w + b)
    loss_ref:       (1,)     f32 SMEM -- mean((xs_out - xu_out)^2) over real cols
    """
    w = w_ref[...]
    b = b_ref[...]
    acc_s = jnp.dot(xs_ref[...], w, preferred_element_type=jnp.float32)
    acc_u = jnp.dot(xu_ref[...], w, preferred_element_type=jnp.float32)
    act_s = jnp.maximum(acc_s + b, 0.0)          # f32 epilogue (v5e-safe)
    act_u = jnp.maximum(acc_u + b, 0.0)
    os_ref[...] = act_s.astype(os_ref.dtype)
    ou_ref[...] = act_u.astype(ou_ref.dtype)
    # Padded columns are identically zero for both halves (zero weight, zero
    # bias, ReLU), so they contribute nothing to the sum of squares; divide
    # by the REAL element count (baked in at trace time).
    d = act_s - act_u
    loss_ref[0] = jnp.sum(d * d) * inv_count


def _delegate_kernel(x_ref, w_ref, b_ref, o_ref):
    """Linear + ReLU only (path used when xu is None)."""
    acc = jnp.dot(x_ref[...], w_ref[...], preferred_element_type=jnp.float32)
    o_ref[...] = jnp.maximum(acc + b_ref[...], 0.0).astype(o_ref.dtype)


# ------------------------------ JAX wrappers --------------------------------

def prepare_delegate_params(w, b):
    """One-time param prep: pad hidden dim to a lane multiple, quantize to bf16.

    Called once ("params at rest"), NOT per forward call.
    Note: bf16 matmul operands deviate slightly from PyTorch's f32 Linear.
    """
    d, h = w.shape
    h_pad = max(LANE, pl.cdiv(h, LANE) * LANE)
    w_p = jnp.pad(w, ((0, 0), (0, h_pad - h))).astype(jnp.bfloat16)
    b_p = jnp.pad(b.reshape(1, h), ((0, 0), (0, h_pad - h))).astype(jnp.float32)
    return w_p, b_p


def dual_forward(xs, xu, w_p, b_p, *, hidden):
    """Semantics of Dual.forward(xs, xu) with one fused delegate+loss kernel.

    Returns lane-dense padded activations (N, h_pad); only the first `hidden`
    columns are meaningful (keep downstream consumers on the padded slab).
    """
    n = xs.shape[0]
    d = xs.size // n
    h_pad = w_p.shape[1]

    xs2 = xs.reshape(n, d).astype(jnp.bfloat16)

    if xu is None:
        out = pl.pallas_call(
            _delegate_kernel,
            out_shape=jax.ShapeDtypeStruct((n, h_pad), jnp.bfloat16),
            in_specs=[
                pl.BlockSpec((n, d), lambda: (0, 0)),
                pl.BlockSpec((d, h_pad), lambda: (0, 0)),
                pl.BlockSpec((1, h_pad), lambda: (0, 0)),
            ],
            out_specs=pl.BlockSpec((n, h_pad), lambda: (0, 0)),
        )(xs2, w_p, b_p)
        return out, None, jnp.float32(0.0)

    xu2 = xu.reshape(n, d).astype(jnp.bfloat16)

    kernel = functools.partial(_dual_fused_kernel,
                               inv_count=1.0 / float(n * hidden))

    xs_out, xu_out, loss = pl.pallas_call(
        kernel,
        out_shape=(
            jax.ShapeDtypeStruct((n, h_pad), jnp.bfloat16),
            jax.ShapeDtypeStruct((n, h_pad), jnp.bfloat16),
            jax.ShapeDtypeStruct((1,), jnp.float32),
        ),
        in_specs=[
            pl.BlockSpec((n, d), lambda: (0, 0)),
            pl.BlockSpec((n, d), lambda: (0, 0)),
            pl.BlockSpec((d, h_pad), lambda: (0, 0)),
            pl.BlockSpec((1, h_pad), lambda: (0, 0)),
        ],
        out_specs=(
            pl.BlockSpec((n, h_pad), lambda: (0, 0)),
            pl.BlockSpec((n, h_pad), lambda: (0, 0)),
            pl.BlockSpec(memory_space=pltpu.MemorySpace.SMEM),
        ),
        cost_estimate=pl.CostEstimate(
            flops=4 * n * d * h_pad + 8 * n * h_pad,
            transcendentals=0,
            bytes_accessed=(2 * n * d * 2          # xs2 + xu2 (bf16)
                            + d * h_pad * 2        # weight (bf16)
                            + h_pad * 4            # bias (f32)
                            + 2 * n * h_pad * 2    # two bf16 outputs
                            + 4),                  # scalar loss
        ),
    )(xs2, xu2, w_p, b_p)

    return xs_out, xu_out, loss[0]


# --------------------------------- main --------------------------------------

if __name__ == "__main__":
    key = jax.random.PRNGKey(0)
    k_xs, k_xu, k_w, k_b = jax.random.split(key, 4)

    N, C, H, W = 2, 4, 16, 16
    HIDDEN = 32
    D = C * H * W

    xs = jax.random.normal(k_xs, (N, C, H, W), dtype=jnp.float32)
    xu = jax.random.normal(k_xu, (N, C, H, W), dtype=jnp.float32)

    # Deterministic synthetic parameters for the delegate Linear layer.
    w = jax.random.normal(k_w, (D, HIDDEN), dtype=jnp.float32) * 0.02
    b = jax.random.normal(k_b, (1, HIDDEN), dtype=jnp.float32) * 0.1

    # Params padded / bf16-quantized ONCE, at rest (hoisted out of the call).
    w_p, b_p = prepare_delegate_params(w, b)

    fwd = jax.jit(functools.partial(dual_forward, hidden=HIDDEN))
    xs_out, xu_out, loss_weight = fwd(xs, xu, w_p, b_p)
    jax.block_until_ready((xs_out, xu_out, loss_weight))

    # Reference in plain JAX (same bf16 matmul operands, f32 accumulate/epilogue).
    def ref_delegate(x):
        x2 = x.reshape(x.shape[0], -1).astype(jnp.bfloat16)
        y = jnp.dot(x2, w.astype(jnp.bfloat16),
                    preferred_element_type=jnp.float32)
        return jnp.maximum(y + b, 0.0)

    rs, ru = ref_delegate(xs), ref_delegate(xu)
    rloss = jnp.mean((rs - ru) ** 2)

    # Outputs are stored in bf16 -> compare with bf16-level tolerance.
    assert jnp.allclose(xs_out[:, :HIDDEN].astype(jnp.float32), rs,
                        atol=2e-2, rtol=2e-2)
    assert jnp.allclose(xu_out[:, :HIDDEN].astype(jnp.float32), ru,
                        atol=2e-2, rtol=2e-2)
    # Loss is accumulated in f32 inside the kernel.
    assert jnp.allclose(loss_weight, rloss, atol=1e-3, rtol=1e-3)
    # Padded lane columns must be exactly zero on both sides.
    assert jnp.all(xs_out[:, HIDDEN:] == 0) and jnp.all(xu_out[:, HIDDEN:] == 0)

    print("KERNEL_OK")
</pallas_src>

<mosaic_0001>
module attributes {stable_mosaic.version = 11 : i64} {
  func.func @_dual_fused_kernel(%arg0: memref<2x1024xbf16, #tpu.memory_space<vmem>>, %arg1: memref<2x1024xbf16, #tpu.memory_space<vmem>>, %arg2: memref<1024x128xbf16, #tpu.memory_space<vmem>>, %arg3: memref<1x128xf32, #tpu.memory_space<vmem>>, %arg4: memref<2x128xbf16, #tpu.memory_space<vmem>>, %arg5: memref<2x128xbf16, #tpu.memory_space<vmem>>, %arg6: memref<1xf32, #tpu.memory_space<smem>>) attributes {dimension_semantics = [], scalar_prefetch = 0 : i64, scratch_operands = 0 : i64, tpu.core_type = #tpu.core_type<tc>} {
    %c0 = arith.constant 0 : index
    %c0_0 = arith.constant 0 : index
    %0 = vector.load %arg2[%c0, %c0_0] : memref<1024x128xbf16, #tpu.memory_space<vmem>>, vector<1024x128xbf16>
    %c0_1 = arith.constant 0 : index
    %c0_2 = arith.constant 0 : index
    %1 = vector.load %arg3[%c0_1, %c0_2] : memref<1x128xf32, #tpu.memory_space<vmem>>, vector<1x128xf32>
    %c0_3 = arith.constant 0 : index
    %c0_4 = arith.constant 0 : index
    %2 = vector.load %arg0[%c0_3, %c0_4] : memref<2x1024xbf16, #tpu.memory_space<vmem>>, vector<2x1024xbf16>
    %cst = arith.constant dense<0.000000e+00> : vector<2x128xf32>
    %3 = tpu.matmul %2, %0, %cst {dimension_numbers = #tpu.dot_dimension_numbers<[1], [0], [0], [1], [0, 0, 1, 1], [], []>} : vector<2x1024xbf16>, vector<1024x128xbf16>, vector<2x128xf32> -> vector<2x128xf32>
    %c0_5 = arith.constant 0 : index
    %c0_6 = arith.constant 0 : index
    %4 = vector.load %arg1[%c0_5, %c0_6] : memref<2x1024xbf16, #tpu.memory_space<vmem>>, vector<2x1024xbf16>
    %cst_7 = arith.constant dense<0.000000e+00> : vector<2x128xf32>
    %5 = tpu.matmul %4, %0, %cst_7 {dimension_numbers = #tpu.dot_dimension_numbers<[1], [0], [0], [1], [0, 0, 1, 1], [], []>} : vector<2x1024xbf16>, vector<1024x128xbf16>, vector<2x128xf32> -> vector<2x128xf32>
    %6 = vector.broadcast %1 : vector<1x128xf32> to vector<2x128xf32>
    %7 = arith.addf %3, %6 : vector<2x128xf32>
    %cst_8 = arith.constant 0.000000e+00 : f32
    %8 = vector.broadcast %cst_8 : f32 to vector<2x128xf32>
    %9 = arith.maximumf %7, %8 : vector<2x128xf32>
    %10 = vector.broadcast %1 : vector<1x128xf32> to vector<2x128xf32>
    %11 = arith.addf %5, %10 : vector<2x128xf32>
    %cst_9 = arith.constant 0.000000e+00 : f32
    %12 = vector.broadcast %cst_9 : f32 to vector<2x128xf32>
    %13 = arith.maximumf %11, %12 : vector<2x128xf32>
    %14 = arith.truncf %9 : vector<2x128xf32> to vector<2x128xbf16>
    %c0_10 = arith.constant 0 : index
    %c0_11 = arith.constant 0 : index
    %15 = vector.load %arg4[%c0_10, %c0_11] : memref<2x128xbf16, #tpu.memory_space<vmem>>, vector<2x128xbf16>
    tpu.vector_store %arg4[%c0_10, %c0_11], %14 {strides = array<i32>} : memref<2x128xbf16, #tpu.memory_space<vmem>>, vector<2x128xbf16>,
    %16 = arith.truncf %13 : vector<2x128xf32> to vector<2x128xbf16>
    %c0_12 = arith.constant 0 : index
    %c0_13 = arith.constant 0 : index
    %17 = vector.load %arg5[%c0_12, %c0_13] : memref<2x128xbf16, #tpu.memory_space<vmem>>, vector<2x128xbf16>
    tpu.vector_store %arg5[%c0_12, %c0_13], %16 {strides = array<i32>} : memref<2x128xbf16, #tpu.memory_space<vmem>>, vector<2x128xbf16>,
    %18 = arith.subf %9, %13 : vector<2x128xf32>
    %19 = arith.mulf %18, %18 : vector<2x128xf32>
    %20 = vector.shape_cast %19 : vector<2x128xf32> to vector<1x2x128xf32>
    %cst_14 = arith.constant dense<0.000000e+00> : vector<1xf32>
    %21 = vector.multi_reduction <add>, %20, %cst_14 [1, 2] : vector<1x2x128xf32> to vector<1xf32>
    %22 = vector.shape_cast %21 : vector<1xf32> to vector<1x1x1xf32>
    %23 = vector.extract %22[0, 0, 0] : f32 from vector<1x1x1xf32>
    %cst_15 = arith.constant 1.562500e-02 : f32
    %24 = arith.mulf %23, %cst_15 : f32
    %c0_16 = arith.constant 0 : index
    %25 = memref.load %arg6[%c0_16] : memref<1xf32, #tpu.memory_space<smem>>
    memref.store %24, %arg6[%c0_16] : memref<1xf32, #tpu.memory_space<smem>>
    return
  }
}

</mosaic_0001>

<bundles_post_ra>
// kernel: dual_forward.1
= control target key start
LH: loop header
LB: loop body
LE: loop exit
PB: predicated region body
PF: predicated region fallthrough
CT: control target
= control target key end

     0   :  { %12 = vsyncpa [#allocation3], 0  ;;  %s1750_s0 = inlined_call_operand.vmem [shape: bf16[2,1024], index: 0, kind: input, shape index: {}]   ;;  %s1751_s1 = inlined_call_operand.vmem [shape: bf16[2,1024], index: 1, kind: input, shape index: {}]   ;;  %s1752_s2 = inlined_call_operand.vmem [shape: bf16[1024,128], index: 2, kind: input, shape index: {}]   ;;  %s1753_s3 = inlined_call_operand.vmem [shape: f32[1,128], index: 3, kind: input, shape index: {}]   ;;  %s1754_s4 = inlined_call_operand.hbm [shape: bf16[2,128], index: 4, kind: output, shape index: {0}]   ;;  %s1755_s5 = inlined_call_operand.hbm [shape: bf16[2,128], index: 5, kind: output, shape index: {1}]   ;;  %s1756_s6 = inlined_call_operand.hbm [shape: f32[1], index: 6, kind: output, shape index: {2}]  }
   0x1   :  { %13 = vsyncpa [#allocation6], 0  ;;  %v1287_v0 = vld [vmem:[%s1752_s2 + $0x38] sm:$0xff]  ;;  %v1309_v4 = vld [vmem:[%s1752_s2 + $0x30] sm:$0xff] }
   0x2   :  { %v1292_v1 = vld [vmem:[%s1752_s2 + $0x78] sm:$0xff]  ;;  %559 = vmatpush.bf16.msra.mxu0 %v1287_v0  ;;  %v1314_v5 = vld [vmem:[%s1752_s2 + $0x70] sm:$0xff]  ;;  %v1333_v8 = vld [vmem:[%s1752_s2 + $0x28] sm:$0xff] }
   0x3   :  { %v1297_v2 = vld [vmem:[%s1752_s2 + $0xb8] sm:$0xff]  ;;  %572 = vmatpush.bf16.msra.mxu1 %v1292_v1  ;;  %v1321_v6 = vld [vmem:[%s1752_s2 + $0xb0] sm:$0xff]  ;;  %v1338_v9 = vld [vmem:[%s1752_s2 + $0x68] sm:$0xff] }
   0x4   :  { %v1302_v3 = vld [vmem:[%s1752_s2 + $0xf8] sm:$0xff]  ;;  %585 = vmatpush.bf16.msra.mxu2 %v1297_v2  ;;  %v1326_v7 = vld [vmem:[%s1752_s2 + $0xf0] sm:$0xff]  ;;  %v1345_v10 = vld [vmem:[%s1752_s2 + $0xa8] sm:$0xff] }
   0x5   :  { %598 = vmatpush.bf16.msra.mxu3 %v1302_v3  ;;  %v1350_v11 = vld [vmem:[%s1752_s2 + $0xe8] sm:$0xff]  ;;  %v1357_v12 = vld [vmem:[%s1752_s2 + $0x20] sm:$0xff]  ;;  %v1381_v16 = vld [vmem:[%s1752_s2 + $0x18] sm:$0xff] }
   0x6   :  { %560 = vmatpush.bf16.msra.mxu0 %v1309_v4  ;;  %v1362_v13 = vld [vmem:[%s1752_s2 + $0x60] sm:$0xff]  ;;  %v1386_v17 = vld [vmem:[%s1752_s2 + $0x58] sm:$0xff]  ;;  %v1403_v20 = vld [vmem:[%s1752_s2 + $0x10] sm:$0xff] }
   0x7   :  { %573 = vmatpush.bf16.msra.mxu1 %v1314_v5  ;;  %v1369_v14 = vld [vmem:[%s1752_s2 + $0xa0] sm:$0xff]  ;;  %v1393_v18 = vld [vmem:[%s1752_s2 + $0x98] sm:$0xff]  ;;  %v1408_v21 = vld [vmem:[%s1752_s2 + $0x50] sm:$0xff] }
   0x8   :  { %586 = vmatpush.bf16.msra.mxu2 %v1321_v6  ;;  %v1374_v15 = vld [vmem:[%s1752_s2 + $0xe0] sm:$0xff]  ;;  %v1398_v19 = vld [vmem:[%s1752_s2 + $0xd8] sm:$0xff] }
   0x9   :  { %599 = vmatpush.bf16.msra.mxu3 %v1326_v7  ;;  %v152_v22 = vld [vmem:[%s1750_s0] sm:$0xff] }
   0xa   :  { %561 = vmatpush.bf16.msra.mxu0 %v1333_v8  ;;  %158 = vst [vmem:[#allocation1] ss:$9 sm:$0xff] %v152_v22 }
   0xb   :  { %574 = vmatpush.bf16.msra.mxu1 %v1338_v9 }
   0xc   :  { %587 = vmatpush.bf16.msra.mxu2 %v1345_v10 }
   0xd   :  { %600 = vmatpush.bf16.msra.mxu3 %v1350_v11 }
   0xe   :  { %562 = vmatpush.bf16.msra.mxu0 %v1357_v12 }
   0xf   :  { %575 = vmatpush.bf16.msra.mxu1 %v1362_v13 }
  0x10   :  { %588 = vmatpush.bf16.msra.mxu2 %v1369_v14 }
  0x11   :  { %601 = vmatpush.bf16.msra.mxu3 %v1374_v15 }
  0x12   :  { %563 = vmatpush.bf16.msra.mxu0 %v1381_v16 }
  0x13   :  { %576 = vmatpush.bf16.msra.mxu1 %v1386_v17 }
  0x14   :  { %14 = vsyncpa [#allocation4], 0  ;;  %589 = vmatpush.bf16.msra.mxu2 %v1393_v18  ;;  %v1420_v23 = vld [vmem:[%s1752_s2 + $0x90] sm:$0xff]  ;;  %v1432_v25 = vld [vmem:[%s1752_s2 + $0x8] sm:$0xff]  ;;  %vm793_vm0 = vcmask 1041408   ;;  %s814_s7 = sshll.u32 %s1754_s4, 4  ;;  %s815_s7 = int_to_ptr.hbm [resolvable:$true] %s814_s7 }
  0x15   :  { %602 = vmatpush.bf16.msra.mxu3 %v1398_v19  ;;  %v1425_v24 = vld [vmem:[%s1752_s2 + $0xd0] sm:$0xff]  ;;  %v1437_v26 = vld [vmem:[%s1752_s2 + $0x48] sm:$0xff]  ;;  %v1456_v29 = vld [vmem:[%s1752_s2] sm:$0xff]  ;;  %s1247_s8 = smov [#allocation5]   ;;  %s825_s12 = sshll.u32 %s1755_s5, 4  ;;  %s826_s12 = int_to_ptr.hbm [resolvable:$true] %s825_s12 }
  0x16   :  { %564 = vmatpush.bf16.msra.mxu0 %v1403_v20  ;;  %v1444_v27 = vld [vmem:[%s1752_s2 + $0x88] sm:$0xff]  ;;  %v1461_v30 = vld [vmem:[%s1752_s2 + $0x40] sm:$0xff]  ;;  %v1478_v33 = vld [vmem:[%s1752_s2 + $0x138] sm:$0xff]  ;;  %s823_s9 = sshll.u32 %s1247_s8, 4  ;;  %s834_s14 = sshll.u32 %s1756_s6, 4  ;;  %s824_s9 = int_to_ptr.vmem [resolvable:$true] %s823_s9  ;;  %s835_s14 = int_to_ptr.hbm [resolvable:$true] %s834_s14 }
  0x17   :  { %577 = vmatpush.bf16.msra.mxu1 %v1408_v21  ;;  %v1449_v28 = vld [vmem:[%s1752_s2 + $0xc8] sm:$0xff]  ;;  %v1468_v31 = vld [vmem:[%s1752_s2 + $0x80] sm:$0xff]  ;;  %v1483_v34 = vld [vmem:[%s1752_s2 + $0x178] sm:$0xff]  ;;  %s1248_s5 = smov [#allocation7]  }
  0x18   :  { %590 = vmatpush.bf16.msra.mxu2 %v1420_v23  ;;  %v1473_v32 = vld [vmem:[%s1752_s2 + $0xc0] sm:$0xff]  ;;  %v1488_v35 = vld [vmem:[%s1752_s2 + $0x1b8] sm:$0xff]  ;;  %v1502_v37 = vld [vmem:[%s1752_s2 + $0x130] sm:$0xff] }
  0x19   :  { %603 = vmatpush.bf16.msra.mxu3 %v1425_v24  ;;  %v1493_v36 = vld [vmem:[%s1752_s2 + $0x1f8] sm:$0xff]  ;;  %v159_v39 = vld [vmem:[#allocation1] sm:$0xff]  ;;  %v1509_v40 = vld [vmem:[%s1752_s2 + $0x170] sm:$0xff] }
  0x1a   :  { %565 = vmatpush.bf16.msra.mxu0 %v1432_v25  ;;  %v161_v38 = vld [vmem:[#allocation1 + $0x12] sm:$0xff]  ;;  %v162_v41 = vld [vmem:[#allocation1 + $0x1b] sm:$0xff]  ;;  %v160_v42 = vld [vmem:[#allocation1 + $0x9] sm:$0xff] }
  0x1b   :  { %578 = vmatpush.bf16.msra.mxu1 %v1437_v26  ;;  %v1516_v43 = vld [vmem:[%s1752_s2 + $0x1b0] sm:$0xff]  ;;  %v1528_v45 = vld [vmem:[%s1752_s2 + $0x128] sm:$0xff]  ;;  %v1550_v49 = vld [vmem:[%s1752_s2 + $0x120] sm:$0xff] }
  0x1c   :  { %591 = vmatpush.bf16.msra.mxu2 %v1444_v27  ;;  %v1521_v44 = vld [vmem:[%s1752_s2 + $0x1f0] sm:$0xff]  ;;  %v1533_v46 = vld [vmem:[%s1752_s2 + $0x168] sm:$0xff]  ;;  %v1555_v50 = vld [vmem:[%s1752_s2 + $0x160] sm:$0xff] }
  0x1d   :  { %604 = vmatpush.bf16.msra.mxu3 %v1449_v28  ;;  %v1540_v47 = vld [vmem:[%s1752_s2 + $0x1a8] sm:$0xff]  ;;  %v165_v51 = vld [vmem:[#allocation1 + $0x36] sm:$0xff]  ;;  %v153_v52 = vld [vmem:[%s1751_s1] sm:$0xff] }
  0x1e   :  { %566 = vmatpush.bf16.msra.mxu0 %v1456_v29  ;;  %v1545_v48 = vld [vmem:[%s1752_s2 + $0x1e8] sm:$0xff]  ;;  %v166_v54 = vld [vmem:[#allocation1 + $0x3f] sm:$0xff]  ;;  %v1603_v62 = vld [vmem:[%s1752_s2 + $0x110] sm:$0xff] }
  0x1f   :  { %579 = vmatpush.bf16.msra.mxu1 %v1461_v30  ;;  %v163_v53 = vld [vmem:[#allocation1 + $0x24] sm:$0xff]  ;;  %v164_v55 = vld [vmem:[#allocation1 + $0x2d] sm:$0xff]  ;;  %v1579_v58 = vld [vmem:[%s1752_s2 + $0x118] sm:$0xff] }
  0x20   :  { %592 = vmatpush.bf16.msra.mxu2 %v1468_v31  ;;  %v1567_v56 = vld [vmem:[%s1752_s2 + $0x1a0] sm:$0xff]  ;;  %665 = vst [vmem:[#allocation1] ss:$9 sm:$0xff] %v153_v52  ;;  %v1584_v59 = vld [vmem:[%s1752_s2 + $0x158] sm:$0xff]  ;;  %v1608_v63 = vld [vmem:[%s1752_s2 + $0x150] sm:$0xff] }
  0x21   :  { %605 = vmatpush.bf16.msra.mxu3 %v1473_v32  ;;  %567 = vmatmul.bf16.vlgmr.msra.gmra.mxu0 %v159_v39  ;;  %v1572_v57 = vld [vmem:[%s1752_s2 + $0x1e0] sm:$0xff]  ;;  %v1591_v60 = vld [vmem:[%s1752_s2 + $0x198] sm:$0xff]  ;;  %v1615_v22 = vld [vmem:[%s1752_s2 + $0x190] sm:$0xff] }
  0x22   :  { %611 = vmatpush.bf16.msrb.mxu0 %v1478_v33  ;;  %580 = vmatmul.bf16.vlgmr.msra.gmra.mxu1 %v160_v42  ;;  %v1596_v61 = vld [vmem:[%s1752_s2 + $0x1d8] sm:$0xff]  ;;  %1761 = vst [vmem:[#allocation11_spill] sm:$0xff] %v1615_v22  ;;  %v1627_v39 = vld [vmem:[%s1752_s2 + $0x108] sm:$0xff] }
  0x23   :  { %624 = vmatpush.bf16.msrb.mxu1 %v1483_v34  ;;  %593 = vmatmul.bf16.vlgmr.msra.gmra.mxu2 %v161_v38  ;;  %v1620_v38 = vld [vmem:[%s1752_s2 + $0x1d0] sm:$0xff]  ;;  %1763 = vst [vmem:[#allocation13_spill] sm:$0xff] %v1627_v39  ;;  %v1639_v42 = vld [vmem:[%s1752_s2 + $0x188] sm:$0xff] }
  0x24   :  { %637 = vmatpush.bf16.msrb.mxu2 %v1488_v35  ;;  %606 = vmatmul.bf16.vlgmr.msra.gmra.mxu3 %v162_v41  ;;  %1762 = vst [vmem:[#allocation12_spill] sm:$0xff] %v1620_v38  ;;  %v1632_v41 = vld [vmem:[%s1752_s2 + $0x148] sm:$0xff] }
  0x25   :  { %650 = vmatpush.bf16.msrb.mxu3 %v1493_v36  ;;  %1764 = vst [vmem:[#allocation14_spill] sm:$0xff] %v1632_v41  ;;  %v1644_v52 = vld [vmem:[%s1752_s2 + $0x1c8] sm:$0xff] }
  0x26   :  { %612 = vmatpush.bf16.msrb.mxu0 %v1502_v37 }
  0x27   :  { %625 = vmatpush.bf16.msrb.mxu1 %v1509_v40 }
  0x28   :  { %638 = vmatpush.bf16.msrb.mxu2 %v1516_v43 }
  0x29   :  { %651 = vmatpush.bf16.msrb.mxu3 %v1521_v44 }
  0x2a   :  { %613 = vmatpush.bf16.msrb.mxu0 %v1528_v45 }
  0x2b   :  { %626 = vmatpush.bf16.msrb.mxu1 %v1533_v46 }
  0x2c   :  { %639 = vmatpush.bf16.msrb.mxu2 %v1540_v47 }
  0x2d   :  { %652 = vmatpush.bf16.msrb.mxu3 %v1545_v48 }
  0x2e   :  { %614 = vmatpush.bf16.msrb.mxu0 %v1550_v49 }
  0x2f   :  { %627 = vmatpush.bf16.msrb.mxu1 %v1555_v50 }
  0x30   :  { %640 = vmatpush.bf16.msrb.mxu2 %v1567_v56 }
  0x31   :  { %653 = vmatpush.bf16.msrb.mxu3 %v1572_v57 }
  0x32   :  { %615 = vmatpush.bf16.msrb.mxu0 %v1579_v58 }
  0x33   :  { %628 = vmatpush.bf16.msrb.mxu1 %v1584_v59 }
  0x34   :  { %641 = vmatpush.bf16.msrb.mxu2 %v1591_v60 }
  0x35   :  { %654 = vmatpush.bf16.msrb.mxu3 %v1596_v61 }
  0x36   :  { %616 = vmatpush.bf16.msrb.mxu0 %v1603_v62 }
  0x37   :  { %629 = vmatpush.bf16.msrb.mxu1 %v1608_v63 }
  0x38   :  { %642 = vmatpush.bf16.msrb.mxu2 %v1615_v22  ;;  %v1651_v22 = vld [vmem:[%s1752_s2 + $0x100] sm:$0xff] }
  0x39   :  { %655 = vmatpush.bf16.msrb.mxu3 %v1620_v38  ;;  %v1656_v38 = vld [vmem:[%s1752_s2 + $0x140] sm:$0xff] }
  0x3a   :  { %617 = vmatpush.bf16.msrb.mxu0 %v1627_v39  ;;  %v1663_v39 = vld [vmem:[%s1752_s2 + $0x180] sm:$0xff] }
  0x3b   :  { %630 = vmatpush.bf16.msrb.mxu1 %v1632_v41  ;;  %v1668_v41 = vld [vmem:[%s1752_s2 + $0x1c0] sm:$0xff] }
  0x3c   :  { %643 = vmatpush.bf16.msrb.mxu2 %v1639_v42 }
  0x3d   :  { %656 = vmatpush.bf16.msrb.mxu3 %v1644_v52 }
  0x3e   :  { %618 = vmatpush.bf16.msrb.mxu0 %v1651_v22 }
  0x3f   :  { %631 = vmatpush.bf16.msrb.mxu1 %v1656_v38 }
  0x40   :  { %644 = vmatpush.bf16.msrb.mxu2 %v1663_v39 }
  0x41   :  { %657 = vmatpush.bf16.msrb.mxu3 %v1668_v41  ;;  %619 = vmatmul.bf16.vlgmr.msrb.gmra.mxu0 %v163_v53 }
  0x42   :  { %682 = vmatpush.bf16.msra.mxu0 %v1287_v0  ;;  %632 = vmatmul.bf16.vlgmr.msrb.gmra.mxu1 %v164_v55  ;;  %v668_v0 = vld [vmem:[#allocation1 + $0x12] sm:$0xff] }
  0x43   :  { %695 = vmatpush.bf16.msra.mxu1 %v1292_v1  ;;  %645 = vmatmul.bf16.vlgmr.msrb.gmra.mxu2 %v165_v51  ;;  %v666_v1 = vld [vmem:[#allocation1] sm:$0xff] }
  0x44   :  { %708 = vmatpush.bf16.msra.mxu2 %v1297_v2  ;;  %658 = vmatmul.bf16.vlgmr.msrb.gmra.mxu3 %v166_v54  ;;  %v669_v2 = vld [vmem:[#allocation1 + $0x1b] sm:$0xff] }
  0x45   :  { %721 = vmatpush.bf16.msra.mxu3 %v1302_v3  ;;  %v667_v3 = vld [vmem:[#allocation1 + $0x9] sm:$0xff] }
  0x46   :  { %683 = vmatpush.bf16.msra.mxu0 %v1309_v4  ;;  %v1765_v4 = vld [vmem:[#allocation11_spill] sm:$0xff] }
  0x47   :  { %696 = vmatpush.bf16.msra.mxu1 %v1314_v5  ;;  %v1766_v5 = vld [vmem:[#allocation12_spill] sm:$0xff] }
  0x48   :  { %709 = vmatpush.bf16.msra.mxu2 %v1321_v6  ;;  %v1767_v6 = vld [vmem:[#allocation13_spill] sm:$0xff] }
  0x49   :  { %722 = vmatpush.bf16.msra.mxu3 %v1326_v7  ;;  %v1768_v7 = vld [vmem:[#allocation14_spill] sm:$0xff] }
  0x4a   :  { %684 = vmatpush.bf16.msra.mxu0 %v1333_v8  ;;  %v670_v8 = vld [vmem:[#allocation1 + $0x24] sm:$0xff] }
  0x4b   :  { %697 = vmatpush.bf16.msra.mxu1 %v1338_v9  ;;  %v671_v9 = vld [vmem:[#allocation1 + $0x2d] sm:$0xff] }
  0x4c   :  { %710 = vmatpush.bf16.msra.mxu2 %v1345_v10  ;;  %v672_v10 = vld [vmem:[#allocation1 + $0x36] sm:$0xff] }
  0x4d   :  { %723 = vmatpush.bf16.msra.mxu3 %v1350_v11  ;;  %v673_v11 = vld [vmem:[#allocation1 + $0x3f] sm:$0xff] }
  0x4e   :  { %685 = vmatpush.bf16.msra.mxu0 %v1357_v12 }
  0x4f   :  { %698 = vmatpush.bf16.msra.mxu1 %v1362_v13 }
  0x50   :  { %711 = vmatpush.bf16.msra.mxu2 %v1369_v14 }
  0x51   :  { %724 = vmatpush.bf16.msra.mxu3 %v1374_v15 }
  0x52   :  { %686 = vmatpush.bf16.msra.mxu0 %v1381_v16 }
  0x53   :  { %699 = vmatpush.bf16.msra.mxu1 %v1386_v17 }
  0x54   :  { %712 = vmatpush.bf16.msra.mxu2 %v1393_v18  ;;  %v1179_v18 = vld [vmem:[%s1753_s3] ss:$0 sm:$0xff]  ;;  %s1246_s3 = smov [#allocation2]  }
  0x55   :  { %725 = vmatpush.bf16.msra.mxu3 %v1398_v19  ;;  %s812_s28 = sshll.u32 %s1246_s3, 4  ;;  %s813_s28 = int_to_ptr.vmem [resolvable:$true] %s812_s28 }
  0x56   :  { %687 = vmatpush.bf16.msra.mxu0 %v1403_v20 }
  0x57   :  { %700 = vmatpush.bf16.msra.mxu1 %v1408_v21 }
  0x58   :  { %713 = vmatpush.bf16.msra.mxu2 %v1420_v23 }
  0x59   :  { %726 = vmatpush.bf16.msra.mxu3 %v1425_v24 }
  0x5a   :  { %688 = vmatpush.bf16.msra.mxu0 %v1432_v25 }
  0x5b   :  { %701 = vmatpush.bf16.msra.mxu1 %v1437_v26 }
  0x5c   :  { %714 = vmatpush.bf16.msra.mxu2 %v1444_v27 }
  0x5d   :  { %727 = vmatpush.bf16.msra.mxu3 %v1449_v28 }
  0x5e   :  { %689 = vmatpush.bf16.msra.mxu0 %v1456_v29 }
  0x5f   :  { %702 = vmatpush.bf16.msra.mxu1 %v1461_v30 }
  0x60   :  { %715 = vmatpush.bf16.msra.mxu2 %v1468_v31 }
  0x61   :  { %728 = vmatpush.bf16.msra.mxu3 %v1473_v32  ;;  %690 = vmatmul.bf16.vlgmr.msra.gmra.mxu0 %v666_v1 }
  0x62   :  { %734 = vmatpush.bf16.msrb.mxu0 %v1478_v33  ;;  %703 = vmatmul.bf16.vlgmr.msra.gmra.mxu1 %v667_v3 }
  0x63   :  { %747 = vmatpush.bf16.msrb.mxu1 %v1483_v34  ;;  %716 = vmatmul.bf16.vlgmr.msra.gmra.mxu2 %v668_v0 }
  0x64   :  { %760 = vmatpush.bf16.msrb.mxu2 %v1488_v35  ;;  %729 = vmatmul.bf16.vlgmr.msra.gmra.mxu3 %v669_v2 }
  0x65   :  { %773 = vmatpush.bf16.msrb.mxu3 %v1493_v36 }
  0x66   :  { %735 = vmatpush.bf16.msrb.mxu0 %v1502_v37 }
  0x67   :  { %748 = vmatpush.bf16.msrb.mxu1 %v1509_v40 }
  0x68   :  { %761 = vmatpush.bf16.msrb.mxu2 %v1516_v43 }
  0x69   :  { %774 = vmatpush.bf16.msrb.mxu3 %v1521_v44 }
  0x6a   :  { %736 = vmatpush.bf16.msrb.mxu0 %v1528_v45 }
  0x6b   :  { %749 = vmatpush.bf16.msrb.mxu1 %v1533_v46 }
  0x6c   :  { %762 = vmatpush.bf16.msrb.mxu2 %v1540_v47 }
  0x6d   :  { %775 = vmatpush.bf16.msrb.mxu3 %v1545_v48 }
  0x6e   :  { %737 = vmatpush.bf16.msrb.mxu0 %v1550_v49 }
  0x6f   :  { %750 = vmatpush.bf16.msrb.mxu1 %v1555_v50 }
  0x70   :  { %763 = vmatpush.bf16.msrb.mxu2 %v1567_v56 }
  0x71   :  { %776 = vmatpush.bf16.msrb.mxu3 %v1572_v57 }
  0x72   :  { %738 = vmatpush.bf16.msrb.mxu0 %v1579_v58 }
  0x73   :  { %751 = vmatpush.bf16.msrb.mxu1 %v1584_v59 }
  0x74   :  { %764 = vmatpush.bf16.msrb.mxu2 %v1591_v60 }
  0x75   :  { %777 = vmatpush.bf16.msrb.mxu3 %v1596_v61 }
  0x76   :  { %739 = vmatpush.bf16.msrb.mxu0 %v1603_v62 }
  0x77   :  { %752 = vmatpush.bf16.msrb.mxu1 %v1608_v63 }
  0x78   :  { %765 = vmatpush.bf16.msrb.mxu2 %v1765_v4 }
  0x79   :  { %778 = vmatpush.bf16.msrb.mxu3 %v1766_v5 }
  0x7a   :  { %740 = vmatpush.bf16.msrb.mxu0 %v1767_v6 }
  0x7b   :  { %753 = vmatpush.bf16.msrb.mxu1 %v1768_v7 }
  0x7c   :  { %766 = vmatpush.bf16.msrb.mxu2 %v1639_v42 }
  0x7d   :  { %779 = vmatpush.bf16.msrb.mxu3 %v1644_v52 }
  0x7e   :  { %741 = vmatpush.bf16.msrb.mxu0 %v1651_v22 }
  0x7f   :  { %754 = vmatpush.bf16.msrb.mxu1 %v1656_v38 }
  0x80   :  { %767 = vmatpush.bf16.msrb.mxu2 %v1663_v39 }
  0x81   :  { %780 = vmatpush.bf16.msrb.mxu3 %v1668_v41  ;;  %742 = vmatmul.bf16.vlgmr.msrb.gmra.mxu0 %v670_v8 }
  0x82   :  { %755 = vmatmul.bf16.vlgmr.msrb.gmra.mxu1 %v671_v9 }
  0x83   :  { %768 = vmatmul.bf16.vlgmr.msrb.gmra.mxu2 %v672_v10 }
  0x84   :  { %781 = vmatmul.bf16.vlgmr.msrb.gmra.mxu3 %v673_v11 }
  0x9e   :  { %v568_v12 = vpop.f32.mrf.mxu0 }
  0x9f   :  { %v581_v13 = vpop.f32.mrf.mxu1  ;;  %v569_v20 = vadd.f32 %v1179_v18, %v568_v12 }
  0xa1   :  { %v582_v23 = vadd.f32 %v581_v13, %v569_v20 }
  0xa6   :  { %v594_v14 = vpop.f32.mrf.mxu2  ;;  %v570_v16 = vpop.f32.mrf.mxu0 }
  0xa7   :  { %v607_v15 = vpop.f32.mrf.mxu3  ;;  %v583_v17 = vpop.f32.mrf.mxu1  ;;  %v595_v24 = vadd.f32 %v594_v14, %v582_v23 }
  0xa9   :  { %v608_v25 = vadd.f32 %v607_v15, %v595_v24 }
  0xae   :  { %v596_v19 = vpop.f32.mrf.mxu2 }
  0xaf   :  { %v609_v21 = vpop.f32.mrf.mxu3 }
  0xbe   :  { %v620_v26 = vpop.f32.mrf.mxu0 }
  0xbf   :  { %v621_v27 = vadd.f32 %v620_v26, %v608_v25  ;;  %v633_v28 = vpop.f32.mrf.mxu1 }
  0xc1   :  { %v634_v29 = vadd.f32 %v633_v28, %v621_v27 }
  0xc6   :  { %v646_v30 = vpop.f32.mrf.mxu2  ;;  %v622_v33 = vpop.f32.mrf.mxu0 }
  0xc7   :  { %v647_v31 = vadd.f32 %v646_v30, %v634_v29  ;;  %v659_v32 = vpop.f32.mrf.mxu3  ;;  %v635_v35 = vpop.f32.mrf.mxu1 }
  0xc9   :  { %v660_v34 = vadd.f32 %v659_v32, %v647_v31 }
  0xcb   :  { %v663_v36 = vmax.f32 %v660_v34, 0.0 }
  0xcd   :  { %v787_v37 = vpack.c.bf16 %v663_v36, %v663_v36 }
  0xce   :  { %v648_v40 = vpop.f32.mrf.mxu2 }
  0xcf   :  { %v661_v43 = vpop.f32.mrf.mxu3  ;;  %788 = vst [vmem:[#allocation2] sm:$0x1] %v787_v37 }
  0xd0   :  { %817 = dma.vmem_to_hbm [thread:$0]  %s813_s28, 16, %s815_s7, [#allocation3]  }
  0xde   :  { %v691_v44 = vpop.f32.mrf.mxu0 }
  0xdf   :  { %v704_v45 = vpop.f32.mrf.mxu1  ;;  %v692_v53 = vadd.f32 %v1179_v18, %v691_v44 }
  0xe1   :  { %v705_v54 = vadd.f32 %v704_v45, %v692_v53 }
  0xe6   :  { %v717_v46 = vpop.f32.mrf.mxu2  ;;  %v693_v48 = vpop.f32.mrf.mxu0 }
  0xe7   :  { %v730_v47 = vpop.f32.mrf.mxu3  ;;  %v706_v49 = vpop.f32.mrf.mxu1  ;;  %v718_v55 = vadd.f32 %v717_v46, %v705_v54 }
  0xe9   :  { %v731_v56 = vadd.f32 %v730_v47, %v718_v55 }
  0xee   :  { %v719_v50 = vpop.f32.mrf.mxu2 }
  0xef   :  { %v732_v51 = vpop.f32.mrf.mxu3 }
  0xfe   :  { %v743_v57 = vpop.f32.mrf.mxu0 }
  0xff   :  { %v756_v58 = vpop.f32.mrf.mxu1  ;;  %v744_v59 = vadd.f32 %v743_v57, %v731_v56 }
 0x101   :  { %v757_v60 = vadd.f32 %v756_v58, %v744_v59 }
 0x106   :  { %v769_v61 = vpop.f32.mrf.mxu2  ;;  %v745_v22 = vpop.f32.mrf.mxu0 }
 0x107   :  { %v782_v62 = vpop.f32.mrf.mxu3  ;;  %v770_v63 = vadd.f32 %v769_v61, %v757_v60  ;;  %v758_v38 = vpop.f32.mrf.mxu1 }
 0x109   :  { %v783_v39 = vadd.f32 %v782_v62, %v770_v63 }
 0x10b   :  { %v786_v41 = vmax.f32 %v783_v39, 0.0 }
 0x10d   :  { %v791_v42 = vsub.f32 %v663_v36, %v786_v41  ;;  %v789_v52 = vpack.c.bf16 %v786_v41, %v786_v41 }
 0x10e   :  { %v771_v0 = vpop.f32.mrf.mxu2 }
 0x10f   :  { %v784_v1 = vpop.f32.mrf.mxu3  ;;  %v792_v2 = vmul.f32 %v791_v42, %v791_v42  ;;  %790 = vst [vmem:[#allocation5] sm:$0x1] %v789_v52 }
 0x110   :  { %828 = dma.vmem_to_hbm [thread:$0]  %s824_s9, 16, %s826_s12, [#allocation6]  }
 0x111   :  { %v794_v3 = vsel %vm793_vm0, %v792_v2, 0.0 }
 0x112   :  { %795 = vadd.xlane.f32.xlu0 %v794_v3 }
 0x185   :  { %v796_v4 = vpop.xlane.xlu0 %795 }
 0x186   :  { %v797_v5 = vrot.slane %v796_v4, 4 }
 0x188   :  { %v798_v6 = vadd.f32 %v797_v5, %v796_v4 }
 0x18a   :  { %v799_v7 = vrot.slane %v798_v6, 2 }
 0x18c   :  { %v800_v8 = vadd.f32 %v799_v7, %v798_v6 }
 0x18e   :  { %v801_v9 = vrot.slane %v800_v8, 1 }
 0x190   :  { %v802_v10 = vadd.f32 %v801_v9, %v800_v8 }
 0x192   :  { %1174 = vpush %v802_v10 }
 0x1c3   :  { %s1175_s15 = spop %1174 }
 0x1c4   :  { %s804_s16 = smul.f32 0.015625, %s1175_s15 }
 0x1c6   :  { %806 = sst [smem:[#allocation7]] %s804_s16 }
 0x1c7   :  { %837 = dma.smem_to_hbm %s1248_s5, 16, %s835_s14, [#allocation4]  }
 0x1c8   :  { %1240 = dma.done.wait [#allocation3], 16  }
 0x1c9   :  { %1241 = vsyncadd [#allocation3], 4294967280 }
 0x1ca   :  { %1242 = dma.done.wait [#allocation6], 16  }
 0x1cb   :  { %1243 = vsyncadd [#allocation6], 4294967280 }
 0x1cc   :  { %1244 = dma.done.wait [#allocation4], 16  }
 0x1cd   :  { %1245 = vsyncadd [#allocation4], 4294967280 }
 0x1ce   :  { %850 = sfence }
 0x1cf   :  { %851 = vsyncpa [#allocation3], 1 }
 0x1d0   :  { %852 = vsyncpa [#allocation6], 1 }
 0x1d1   :  { %853 = vsyncpa [#allocation4], 1 }

</bundles_post_ra>
